<compile_context>
chip_gen: v5e
topology: v5e:2x2
jax: 0.10.0
libtpu: 0.0.40
codegen_flags: <defaults>
</compile_context>

<pallas_src>
import functools

import jax
import jax.numpy as jnp
from jax.experimental import pallas as pl

EPS = 1e-3


def _bn_kernel(x_ref, gamma_ref, beta_ref, o_ref, *, inv_n):
    # x_ref: (C, L)   gamma_ref/beta_ref: (C, 1)   o_ref: (C, L)
    x = x_ref[...].astype(jnp.float32)

    # Single pass over x for both statistics.
    s = jnp.sum(x, axis=1, keepdims=True)
    sq = jnp.sum(x * x, axis=1, keepdims=True)
    mean = s * inv_n
    var = jnp.maximum(sq * inv_n - mean * mean, 0.0)  # guard cancellation

    # Per-channel fused scale / offset, (C, 1).
    a = gamma_ref[...] * jax.lax.rsqrt(var + EPS)
    b = beta_ref[...] - mean * a

    # One multiply-add sweep over the data.
    o_ref[...] = (x * a + b).astype(o_ref.dtype)


def batchnorm2d_pallas(x_nchw, gamma, beta):
    """Training-mode BatchNorm2d forward. x_nchw: (N, C, H, W)."""
    N, C, H, W = x_nchw.shape
    L = N * H * W

    # NCHW -> (C, N*H*W).  For N == 1 this is a free reshape.
    if N == 1:
        x_cl = x_nchw.reshape(C, L)
    else:
        x_cl = jnp.transpose(x_nchw, (1, 0, 2, 3)).reshape(C, L)

    gamma_col = gamma.astype(jnp.float32).reshape(C, 1)
    beta_col = beta.astype(jnp.float32).reshape(C, 1)

    kernel = functools.partial(_bn_kernel, inv_n=1.0 / L)

    # Single block: whole (C, L) tensor lives in VMEM (~294 KiB for the
    # reference shape), so no grid / no pipelining overhead and no padding.
    out_cl = pl.pallas_call(
        kernel,
        out_shape=jax.ShapeDtypeStruct((C, L), x_cl.dtype),
    )(x_cl, gamma_col, beta_col)

    if N == 1:
        return out_cl.reshape(N, C, H, W)
    return jnp.transpose(out_cl.reshape(C, N, H, W), (1, 0, 2, 3))


if __name__ == "__main__":
    key = jax.random.PRNGKey(0)
    N, C, H, W = 1, 24, 56, 56
    x = jax.random.normal(key, (N, C, H, W), dtype=jnp.float32)

    # PyTorch BatchNorm2d default init: weight (gamma) = 1, bias (beta) = 0.
    gamma = jnp.ones((C,), dtype=jnp.float32)
    beta = jnp.zeros((C,), dtype=jnp.float32)

    out = batchnorm2d_pallas(x, gamma, beta)
    out = jax.block_until_ready(out)

    # Pure-JAX reference (training-mode batch stats, biased variance).
    mean = jnp.mean(x, axis=(0, 2, 3), keepdims=True)
    var = jnp.mean((x - mean) ** 2, axis=(0, 2, 3), keepdims=True)
    ref = (x - mean) / jnp.sqrt(var + EPS) * gamma.reshape(1, C, 1, 1) \
        + beta.reshape(1, C, 1, 1)

    assert out.shape == (N, C, H, W)
    assert jnp.max(jnp.abs(out - ref)) < 1e-4

    print("KERNEL_OK")
</pallas_src>

<mosaic_0001>
module attributes {stable_mosaic.version = 11 : i64} {
  func.func @_bn_kernel(%arg0: memref<24x3136xf32, #tpu.memory_space<vmem>>, %arg1: memref<24x1xf32, #tpu.memory_space<vmem>>, %arg2: memref<24x1xf32, #tpu.memory_space<vmem>>, %arg3: memref<24x3136xf32, #tpu.memory_space<vmem>>) attributes {dimension_semantics = [], scalar_prefetch = 0 : i64, scratch_operands = 0 : i64, tpu.core_type = #tpu.core_type<tc>} {
    %c0 = arith.constant 0 : index
    %c0_0 = arith.constant 0 : index
    %0 = vector.load %arg0[%c0, %c0_0] : memref<24x3136xf32, #tpu.memory_space<vmem>>, vector<24x3136xf32>
    %cst = arith.constant dense<0.000000e+00> : vector<24xf32>
    %1 = vector.multi_reduction <add>, %0, %cst [1] : vector<24x3136xf32> to vector<24xf32>
    %2 = vector.shape_cast %1 : vector<24xf32> to vector<24x1xf32>
    %3 = arith.mulf %0, %0 : vector<24x3136xf32>
    %cst_1 = arith.constant dense<0.000000e+00> : vector<24xf32>
    %4 = vector.multi_reduction <add>, %3, %cst_1 [1] : vector<24x3136xf32> to vector<24xf32>
    %5 = vector.shape_cast %4 : vector<24xf32> to vector<24x1xf32>
    %cst_2 = arith.constant 3.18877544E-4 : f32
    %6 = vector.broadcast %cst_2 : f32 to vector<24x1xf32>
    %7 = arith.mulf %2, %6 : vector<24x1xf32>
    %cst_3 = arith.constant 3.18877544E-4 : f32
    %8 = vector.broadcast %cst_3 : f32 to vector<24x1xf32>
    %9 = arith.mulf %5, %8 : vector<24x1xf32>
    %10 = arith.mulf %7, %7 : vector<24x1xf32>
    %11 = arith.subf %9, %10 : vector<24x1xf32>
    %cst_4 = arith.constant 0.000000e+00 : f32
    %12 = vector.broadcast %cst_4 : f32 to vector<24x1xf32>
    %13 = arith.maximumf %11, %12 : vector<24x1xf32>
    %c0_5 = arith.constant 0 : index
    %c0_6 = arith.constant 0 : index
    %14 = vector.load %arg1[%c0_5, %c0_6] : memref<24x1xf32, #tpu.memory_space<vmem>>, vector<24x1xf32>
    %cst_7 = arith.constant 1.000000e-03 : f32
    %15 = vector.broadcast %cst_7 : f32 to vector<24x1xf32>
    %16 = arith.addf %13, %15 : vector<24x1xf32>
    %17 = math.rsqrt %16 : vector<24x1xf32>
    %18 = arith.mulf %14, %17 : vector<24x1xf32>
    %c0_8 = arith.constant 0 : index
    %c0_9 = arith.constant 0 : index
    %19 = vector.load %arg2[%c0_8, %c0_9] : memref<24x1xf32, #tpu.memory_space<vmem>>, vector<24x1xf32>
    %20 = arith.mulf %7, %18 : vector<24x1xf32>
    %21 = arith.subf %19, %20 : vector<24x1xf32>
    %22 = vector.broadcast %18 : vector<24x1xf32> to vector<24x3136xf32>
    %23 = arith.mulf %0, %22 : vector<24x3136xf32>
    %24 = vector.broadcast %21 : vector<24x1xf32> to vector<24x3136xf32>
    %25 = arith.addf %23, %24 : vector<24x3136xf32>
    %c0_10 = arith.constant 0 : index
    %c0_11 = arith.constant 0 : index
    %26 = vector.load %arg3[%c0_10, %c0_11] : memref<24x3136xf32, #tpu.memory_space<vmem>>, vector<24x3136xf32>
    tpu.vector_store %arg3[%c0_10, %c0_11], %25 {strides = array<i32>} : memref<24x3136xf32, #tpu.memory_space<vmem>>, vector<24x3136xf32>,
    return
  }
}

</mosaic_0001>

<bundles_post_ra>
// kernel: tpu_custom_call.1
= control target key start
LH: loop header
LB: loop body
LE: loop exit
PB: predicated region body
PF: predicated region fallthrough
CT: control target
= control target key end

     0   :  { %8 = vsyncpa [#allocation3], 0  ;;  %s1443_s0 = inlined_call_operand.hbm [shape: f32[24,3136], index: 0, kind: input, shape index: {}]   ;;  %s1444_s1 = inlined_call_operand.vmem [shape: f32[24,1], index: 1, kind: input, shape index: {}]   ;;  %s1445_s2 = inlined_call_operand.vmem [shape: f32[24,1], index: 2, kind: input, shape index: {}]   ;;  %s1446_s3 = inlined_call_operand.hbm [shape: f32[24,3136], index: 3, kind: output, shape index: {}]  }
   0x1   :  { %9 = vsyncpa [#allocation4], 0  ;;  %s14_s14 = sshll.u32 %s1443_s0, 4  ;;  %s747_s15 = smov [#allocation2]   ;;  %s15_s14 = int_to_ptr.hbm [resolvable:$true] %s14_s14 }
   0x2   :  { %s16_s16 = sshll.u32 %s747_s15, 4  ;;  %s748_s17 = smov 3200   ;;  %s17_s16 = int_to_ptr.vmem [resolvable:$true] %s16_s16 }
   0x3   :  { %s749_s18 = smov 200  }
   0x4   :  { %22 = dma.hbm_to_vmem [thread:$0]  %s15_s14, 9600, %s17_s16, [#allocation3], %s748_s17, %s748_s17, %s749_s18  }
   0x5   :  { %743 = dma.done.wait [#allocation3], 9600  }
   0x6   :  { %744 = vsyncadd [#allocation3], 4294957696  ;;  %v778_v0 = vld [vmem:[#allocation2 + $0x190] sm:$0xff]  ;;  %v780_v1 = vld [vmem:[#allocation2 + $0x198] sm:$0xff]  ;;  %vm129_vm0 = vcmask 523264   ;;  %s668_s5 = sshll.u32 %s1446_s3, 4  ;;  %s669_s5 = int_to_ptr.hbm [resolvable:$true] %s668_s5 }
   0x7   :  { %v782_v2 = vld [vmem:[#allocation2 + $0x1a0] sm:$0xff]  ;;  %v161_v3 = vadd.f32 %v780_v1, %v778_v0  ;;  %v786_v4 = vld [vmem:[#allocation2 + $0x1a8] sm:$0xff]  ;;  %v789_v6 = vld [vmem:[#allocation2 + $0x1b0] sm:$0xff]  ;;  %v238_v52 = vmul.f32 %v778_v0, %v778_v0  ;;  %v239_v53 = vmul.f32 %v780_v1, %v780_v1 }
   0x8   :  { %v792_v8 = vld [vmem:[#allocation2 + $0x1b8] sm:$0xff]  ;;  %v795_v10 = vld [vmem:[#allocation2 + $0x1c0] sm:$0xff]  ;;  %v799_v12 = vld [vmem:[#allocation2 + $0x8] sm:$0xff] }
   0x9   :  { %v162_v5 = vadd.f32 %v161_v3, %v782_v2  ;;  %v797_v11 = vld [vmem:[#allocation2] sm:$0xff]  ;;  %1484 = vst [vmem:[#allocation9_spill] sm:$0xff] %v799_v12  ;;  %v802_v14 = vld [vmem:[#allocation2 + $0x10] sm:$0xff]  ;;  %v189_v17 = vmul.f32 %v799_v12, %v799_v12  ;;  %v810_v18 = vld [vmem:[#allocation2 + $0x1c8] sm:$0xff] }
   0xa   :  { %1483 = vst [vmem:[#allocation8_spill] sm:$0xff] %v797_v11  ;;  %v106_v15 = vadd.f32 %v799_v12, %v797_v11  ;;  %v188_v16 = vmul.f32 %v797_v11, %v797_v11  ;;  %v812_v19 = vld [vmem:[#allocation2 + $0x18] sm:$0xff]  ;;  %v816_v22 = vld [vmem:[#allocation2 + $0x1d0] sm:$0xff]  ;;  %v818_v23 = vld [vmem:[#allocation2 + $0x20] sm:$0xff]  ;;  %v190_v24 = vmul.f32 %v802_v14, %v802_v14 }
   0xb   :  { %v163_v7 = vadd.f32 %v162_v5, %v786_v4  ;;  %1485 = vst [vmem:[#allocation10_spill] sm:$0xff] %v802_v14  ;;  %v824_v28 = vld [vmem:[#allocation2 + $0x1d8] sm:$0xff]  ;;  %v826_v29 = vld [vmem:[#allocation2 + $0x28] sm:$0xff]  ;;  %v832_v33 = vld [vmem:[#allocation2 + $0xd0] sm:$0xff]  ;;  %v191_v36 = vmul.f32 %v812_v19, %v812_v19  ;;  %v192_v50 = vmul.f32 %v818_v23, %v818_v23 }
   0xc   :  { %1486 = vst [vmem:[#allocation11_spill] sm:$0xff] %v812_v19  ;;  %v107_v21 = vadd.f32 %v106_v15, %v802_v14  ;;  %v263_v25 = vadd.f32 %v189_v17, %v188_v16  ;;  %v830_v32 = vld [vmem:[#allocation2 + $0xc8] sm:$0xff]  ;;  %v834_v34 = vld [vmem:[#allocation2 + $0x1e0] sm:$0xff]  ;;  %v836_v35 = vld [vmem:[#allocation2 + $0x30] sm:$0xff]  ;;  %v214_v41 = vmul.f32 %v832_v33, %v832_v33  ;;  %v240_v16 = vmul.f32 %v782_v2, %v782_v2 }
   0xd   :  { %v164_v9 = vadd.f32 %v163_v7, %v789_v6  ;;  %1487 = vst [vmem:[#allocation12_spill] sm:$0xff] %v818_v23  ;;  %v213_v40 = vmul.f32 %v830_v32, %v830_v32  ;;  %v846_v42 = vld [vmem:[#allocation2 + $0x1e8] sm:$0xff]  ;;  %v848_v43 = vld [vmem:[#allocation2 + $0x38] sm:$0xff]  ;;  %v854_v47 = vld [vmem:[#allocation2 + $0x1f0] sm:$0xff]  ;;  %v134_v61 = vadd.f32 %v832_v33, %v830_v32  ;;  %v317_v17 = vadd.f32 %v239_v53, %v238_v52 }
   0xe   :  { %v108_v27 = vadd.f32 %v107_v21, %v812_v19  ;;  %1488 = vst [vmem:[#allocation13_spill] sm:$0xff] %v824_v28  ;;  %v264_v37 = vadd.f32 %v263_v25, %v190_v24  ;;  %v850_v44 = vld [vmem:[#allocation2 + $0xd8] sm:$0xff]  ;;  %v856_v48 = vld [vmem:[#allocation2 + $0x40] sm:$0xff]  ;;  %v872_v59 = vld [vmem:[#allocation2 + $0x48] sm:$0xff]  ;;  %v195_v52 = vmul.f32 %v848_v43, %v848_v43 }
   0xf   :  { %v165_v13 = vadd.f32 %v164_v9, %v792_v8  ;;  %1489 = vst [vmem:[#allocation14_spill] sm:$0xff] %v826_v29  ;;  %v858_v49 = vld [vmem:[#allocation2 + $0xe0] sm:$0xff]  ;;  %v215_v56 = vmul.f32 %v850_v44, %v850_v44  ;;  %v290_v57 = vadd.f32 %v214_v41, %v213_v40  ;;  %v870_v58 = vld [vmem:[#allocation2 + $0x1f8] sm:$0xff]  ;;  %v874_v60 = vld [vmem:[#allocation2 + $0xe8] sm:$0xff] }
  0x10   :  { %v109_v31 = vadd.f32 %v108_v27, %v818_v23  ;;  %1490 = vst [vmem:[#allocation15_spill] sm:$0xff] %v830_v32  ;;  %v265_v51 = vadd.f32 %v264_v37, %v191_v36  ;;  %v216_v3 = vmul.f32 %v858_v49, %v858_v49  ;;  %v882_v5 = vld [vmem:[#allocation2 + $0x200] sm:$0xff]  ;;  %v884_v7 = vld [vmem:[#allocation2 + $0x50] sm:$0xff]  ;;  %v217_v24 = vmul.f32 %v874_v60, %v874_v60  ;;  %v898_v27 = vld [vmem:[#allocation2 + $0x58] sm:$0xff] }
  0x11   :  { %v166_v20 = vadd.f32 %v165_v13, %v795_v10  ;;  %1491 = vst [vmem:[#allocation16_spill] sm:$0xff] %v832_v33  ;;  %v886_v9 = vld [vmem:[#allocation2 + $0xf0] sm:$0xff]  ;;  %v193_v13 = vmul.f32 %v826_v29, %v826_v29  ;;  %v291_v25 = vadd.f32 %v290_v57, %v215_v56  ;;  %v135_v36 = vadd.f32 %v134_v61, %v850_v44  ;;  %v963_v32 = vld [vmem:[#allocation2 + $0x228] sm:$0xff]  ;;  %v1024_v19 = vld [vmem:[#allocation2 + $0x138] sm:$0xff] }
  0x12   :  { %1492 = vst [vmem:[#allocation17_spill] sm:$0xff] %v836_v35  ;;  %v110_v39 = vadd.f32 %v109_v31, %v826_v29  ;;  %v266_v15 = vadd.f32 %v265_v51, %v192_v50  ;;  %v194_v31 = vmul.f32 %v836_v35, %v836_v35  ;;  %v241_v37 = vmul.f32 %v786_v4, %v786_v4  ;;  %v917_v50 = vld [vmem:[#allocation2 + $0x60] sm:$0xff]  ;;  %v999_v29 = vld [vmem:[#allocation2 + $0x128] sm:$0xff]  ;;  %v1014_v23 = vld [vmem:[#allocation2 + $0x90] sm:$0xff] }
  0x13   :  { %v167_v26 = vadd.f32 %v166_v20, %v810_v18  ;;  %1493 = vst [vmem:[#allocation18_spill] sm:$0xff] %v848_v43  ;;  %v218_v41 = vmul.f32 %v886_v9, %v886_v9  ;;  %v919_v51 = vld [vmem:[#allocation2 + $0x100] sm:$0xff]  ;;  %v1028_v14 = vld [vmem:[#allocation2 + $0x248] sm:$0xff]  ;;  %v1030_v12 = vld [vmem:[#allocation2 + $0x98] sm:$0xff] }
  0x14   :  { %1494 = vst [vmem:[#allocation19_spill] sm:$0xff] %v850_v44  ;;  %v111_v46 = vadd.f32 %v110_v39, %v836_v35  ;;  %v267_v53 = vadd.f32 %v266_v15, %v193_v13  ;;  %v196_v13 = vmul.f32 %v856_v48, %v856_v48  ;;  %v952_v44 = vld [vmem:[#allocation2 + $0x110] sm:$0xff]  ;;  %v997_v35 = vld [vmem:[#allocation2 + $0x88] sm:$0xff] }
  0x15   :  { %v168_v30 = vadd.f32 %v167_v26, %v816_v22  ;;  %1495 = vst [vmem:[#allocation20_spill] sm:$0xff] %v856_v48  ;;  %v896_v26 = vld [vmem:[#allocation2 + $0x208] sm:$0xff] }
  0x16   :  { %1496 = vst [vmem:[#allocation21_spill] sm:$0xff] %v858_v49  ;;  %v112_v55 = vadd.f32 %v111_v46, %v848_v43  ;;  %v915_v46 = vld [vmem:[#allocation2 + $0x210] sm:$0xff]  ;;  %v268_v15 = vadd.f32 %v267_v53, %v194_v31  ;;  %v197_v31 = vmul.f32 %v872_v59, %v872_v59  ;;  %v967_v43 = vld [vmem:[#allocation2 + $0x118] sm:$0xff]  ;;  %v1053_v11 = vld [vmem:[#allocation2 + $0xa8] sm:$0xff] }
  0x17   :  { %v169_v38 = vadd.f32 %v168_v30, %v824_v28  ;;  %1497 = vst [vmem:[#allocation22_spill] sm:$0xff] %v872_v59  ;;  %v900_v30 = vld [vmem:[#allocation2 + $0xf8] sm:$0xff] }
  0x18   :  { %1498 = vst [vmem:[#allocation23_spill] sm:$0xff] %v874_v60  ;;  %v113_v63 = vadd.f32 %v112_v55, %v856_v48  ;;  %v318_v55 = vadd.f32 %v317_v17, %v240_v16  ;;  %v219_v61 = vmul.f32 %v900_v30, %v900_v30  ;;  %v136_v16 = vadd.f32 %v135_v36, %v858_v49  ;;  %v965_v48 = vld [vmem:[#allocation2 + $0x78] sm:$0xff] }
  0x19   :  { %v170_v45 = vadd.f32 %v169_v38, %v834_v34  ;;  %1499 = vst [vmem:[#allocation24_spill] sm:$0xff] %v884_v7  ;;  %v909_v38 = vmul.f32 %v789_v6, %v789_v6  ;;  %v942_v17 = vmul.f32 %v795_v10, %v795_v10  ;;  %v269_v36 = vadd.f32 %v268_v15, %v195_v52 }
  0x1a   :  { %1500 = vst [vmem:[#allocation25_spill] sm:$0xff] %v886_v9  ;;  %v114_v21 = vadd.f32 %v113_v63, %v872_v59  ;;  %v931_v63 = vld [vmem:[#allocation2 + $0x218] sm:$0xff]  ;;  %v137_v53 = vadd.f32 %v136_v16, %v874_v60  ;;  %v319_v49 = vadd.f32 %v318_v55, %v241_v37  ;;  %v198_v52 = vmul.f32 %v884_v7, %v884_v7 }
  0x1b   :  { %v171_v54 = vadd.f32 %v170_v45, %v846_v42  ;;  %1501 = vst [vmem:[#allocation26_spill] sm:$0xff] %v898_v27  ;;  %v292_v45 = vadd.f32 %v291_v25, %v216_v3  ;;  %v933_v3 = vld [vmem:[#allocation2 + $0x68] sm:$0xff]  ;;  %v220_v25 = vmul.f32 %v919_v51, %v919_v51  ;;  %v270_v37 = vadd.f32 %v269_v36, %v196_v13  ;;  %v984_v13 = vld [vmem:[#allocation2 + $0x80] sm:$0xff]  ;;  %v995_v59 = vld [vmem:[#allocation2 + $0x238] sm:$0xff] }
  0x1c   :  { %1502 = vst [vmem:[#allocation27_spill] sm:$0xff] %v900_v30  ;;  %v115_v40 = vadd.f32 %v114_v21, %v884_v7  ;;  %v138_v55 = vadd.f32 %v137_v53, %v886_v9  ;;  %v974_v15 = vmul.f32 %v810_v18, %v810_v18  ;;  %v986_v36 = vld [vmem:[#allocation2 + $0x120] sm:$0xff]  ;;  %v199_v53 = vmul.f32 %v898_v27, %v898_v27 }
  0x1d   :  { %v172_v62 = vadd.f32 %v171_v54, %v854_v47  ;;  %1503 = vst [vmem:[#allocation28_spill] sm:$0xff] %v917_v50  ;;  %v925_v54 = vmul.f32 %v792_v8, %v792_v8  ;;  %v271_v9 = vadd.f32 %v270_v37, %v197_v31 }
  0x1e   :  { %1504 = vst [vmem:[#allocation29_spill] sm:$0xff] %v919_v51  ;;  %v116_v57 = vadd.f32 %v115_v40, %v898_v27  ;;  %v948_v40 = vld [vmem:[#allocation2 + $0x220] sm:$0xff]  ;;  %v200_v27 = vmul.f32 %v917_v50, %v917_v50 }
  0x1f   :  { %v173_v20 = vadd.f32 %v172_v62, %v870_v58  ;;  %v293_v62 = vadd.f32 %v292_v45, %v217_v24  ;;  %1505 = vst [vmem:[#allocation30_spill] sm:$0xff] %v933_v3  ;;  %v950_v45 = vld [vmem:[#allocation2 + $0x70] sm:$0xff]  ;;  %v272_v31 = vadd.f32 %v271_v9, %v198_v52  ;;  %v201_v9 = vmul.f32 %v933_v3, %v933_v3 }
  0x20   :  { %v117_v24 = vadd.f32 %v116_v57, %v917_v50  ;;  %1507 = vst [vmem:[#allocation32_spill] sm:$0xff] %v950_v45  ;;  %v1016_v50 = vld [vmem:[#allocation2 + $0x130] sm:$0xff] }
  0x21   :  { %v174_v39 = vadd.f32 %v173_v20, %v882_v5  ;;  %v935_v20 = vld [vmem:[#allocation2 + $0x108] sm:$0xff]  ;;  %1508 = vst [vmem:[#allocation33_spill] sm:$0xff] %v952_v44  ;;  %v273_v52 = vadd.f32 %v272_v31, %v199_v53  ;;  %v202_v53 = vmul.f32 %v950_v45, %v950_v45 }
  0x22   :  { %1506 = vst [vmem:[#allocation31_spill] sm:$0xff] %v935_v20  ;;  %v118_v33 = vadd.f32 %v117_v24, %v933_v3 }
  0x23   :  { %v175_v56 = vadd.f32 %v174_v39, %v896_v26  ;;  %v294_v39 = vadd.f32 %v293_v62, %v218_v41  ;;  %v221_v41 = vmul.f32 %v935_v20, %v935_v20  ;;  %1509 = vst [vmem:[#allocation34_spill] sm:$0xff] %v965_v48  ;;  %v274_v31 = vadd.f32 %v273_v52, %v200_v27 }
  0x24   :  { %1510 = vst [vmem:[#allocation35_spill] sm:$0xff] %v967_v43  ;;  %v227_v27 = vmul.f32 %v1024_v19, %v1024_v19  ;;  %v203_v52 = vmul.f32 %v965_v48, %v965_v48 }
  0x25   :  { %v176_v21 = vadd.f32 %v175_v56, %v915_v46  ;;  %v957_v56 = vld [vmem:[#allocation2 + $0x250] sm:$0xff]  ;;  %v295_v62 = vadd.f32 %v294_v39, %v219_v61  ;;  %v119_v61 = vadd.f32 %v118_v33, %v950_v45  ;;  %1511 = vst [vmem:[#allocation36_spill] sm:$0xff] %v986_v36 }
  0x26   :  { %v980_v39 = vld [vmem:[#allocation2 + $0x230] sm:$0xff]  ;;  %v184_v60 = vsel %vm129_vm0, %v957_v56, 0.0  ;;  %1512 = vst [vmem:[#allocation37_spill] sm:$0xff] %v999_v29 }
  0x27   :  { %v177_v57 = vadd.f32 %v176_v21, %v931_v63  ;;  %v222_v21 = vmul.f32 %v952_v44, %v952_v44  ;;  %v296_v24 = vadd.f32 %v295_v62, %v220_v25  ;;  %v120_v7 = vadd.f32 %v119_v61, %v965_v48  ;;  %1513 = vst [vmem:[#allocation38_spill] sm:$0xff] %v1016_v50 }
  0x28   :  { %v223_v25 = vmul.f32 %v967_v43, %v967_v43  ;;  %v224_v61 = vmul.f32 %v986_v36, %v986_v36  ;;  %1514 = vst [vmem:[#allocation39_spill] sm:$0xff] %v1024_v19  ;;  %v204_v48 = vmul.f32 %v984_v13, %v984_v13 }
  0x29   :  { %v178_v16 = vadd.f32 %v177_v57, %v948_v40  ;;  %v139_v57 = vadd.f32 %v138_v55, %v900_v30  ;;  %v297_v62 = vadd.f32 %v296_v24, %v221_v41  ;;  %v1006_v55 = vmul.f32 %v816_v22, %v816_v22  ;;  %v1012_v30 = vld [vmem:[#allocation2 + $0x240] sm:$0xff] }
  0x2a   :  { %v121_v41 = vadd.f32 %v120_v7, %v984_v13 }
  0x2b   :  { %v179_v33 = vadd.f32 %v178_v16, %v963_v32  ;;  %v140_v37 = vadd.f32 %v139_v57, %v919_v51  ;;  %v298_v24 = vadd.f32 %v297_v62, %v222_v21  ;;  %v225_v21 = vmul.f32 %v999_v29, %v999_v29 }
  0x2c   :  { %v122_v51 = vadd.f32 %v121_v41, %v997_v35  ;;  %v1039_v41 = vld [vmem:[#allocation2 + $0x140] sm:$0xff] }
  0x2d   :  { %v180_v16 = vadd.f32 %v179_v33, %v980_v39  ;;  %v141_v57 = vadd.f32 %v140_v37, %v935_v20  ;;  %v320_v33 = vadd.f32 %v319_v49, %v909_v38  ;;  %v299_v62 = vadd.f32 %v298_v24, %v223_v25  ;;  %1515 = vst [vmem:[#allocation40_spill] sm:$0xff] %v1039_v41  ;;  %v1043_v20 = vld [vmem:[#allocation2 + $0xa0] sm:$0xff] }
  0x2e   :  { %v247_v38 = vmul.f32 %v824_v28, %v824_v28  ;;  %v226_v25 = vmul.f32 %v1016_v50, %v1016_v50 }
  0x2f   :  { %v181_v7 = vadd.f32 %v180_v16, %v995_v59  ;;  %v142_v49 = vadd.f32 %v141_v57, %v952_v44  ;;  %v123_v16 = vadd.f32 %v122_v51, %v1014_v23  ;;  %v300_v24 = vadd.f32 %v299_v62, %v224_v61  ;;  %v1055_v61 = vld [vmem:[#allocation2 + $0x148] sm:$0xff] }
  0x30   :  { %v275_v57 = vadd.f32 %v274_v31, %v201_v9  ;;  %v321_v3 = vadd.f32 %v320_v33, %v925_v54  ;;  %1516 = vst [vmem:[#allocation41_spill] sm:$0xff] %v1055_v61  ;;  %v228_v62 = vmul.f32 %v1039_v41, %v1039_v41  ;;  %v1066_v33 = vld [vmem:[#allocation2 + $0xb0] sm:$0xff] }
  0x31   :  { %v182_v37 = vadd.f32 %v181_v7, %v1012_v30  ;;  %v143_v44 = vadd.f32 %v142_v49, %v967_v43  ;;  %v124_v51 = vadd.f32 %v123_v16, %v1030_v12  ;;  %v301_v45 = vadd.f32 %v300_v24, %v225_v21  ;;  %v1068_v24 = vld [vmem:[#allocation2 + $0x150] sm:$0xff] }
  0x32   :  { %v276_v9 = vadd.f32 %v275_v57, %v202_v53  ;;  %v322_v54 = vadd.f32 %v321_v3, %v942_v17  ;;  %1517 = vst [vmem:[#allocation42_spill] sm:$0xff] %v1068_v24  ;;  %v205_v43 = vmul.f32 %v997_v35, %v997_v35  ;;  %v1076_v57 = vld [vmem:[#allocation2 + $0x158] sm:$0xff]  ;;  %v229_v3 = vmul.f32 %v1055_v61, %v1055_v61 }
  0x33   :  { %v183_v7 = vadd.f32 %v182_v37, %v1028_v14  ;;  %v144_v31 = vadd.f32 %v143_v44, %v986_v36  ;;  %v1062_v37 = vld [vmem:[#allocation2 + $0xc0] sm:$0xff]  ;;  %v125_v21 = vadd.f32 %v124_v51, %v1043_v20  ;;  %v302_v16 = vadd.f32 %v301_v45, %v226_v25  ;;  %1518 = vst [vmem:[#allocation43_spill] sm:$0xff] %v1076_v57  ;;  %v1081_v25 = vld [vmem:[#allocation2 + $0xb8] sm:$0xff]  ;;  %v1102_v36 = vld [vmem:[#allocation2 + $0x168] sm:$0xff] }
  0x34   :  { %v277_v28 = vadd.f32 %v276_v9, %v203_v52  ;;  %v248_v44 = vmul.f32 %v834_v34, %v834_v34  ;;  %v323_v45 = vadd.f32 %v322_v54, %v974_v15  ;;  %v130_v52 = vsel %vm129_vm0, %v1062_v37, 0.0 }
  0x35   :  { %v185_v49 = vadd.f32 %v184_v60, %v183_v7  ;;  %v145_v53 = vadd.f32 %v144_v31, %v999_v29  ;;  %v126_v60 = vadd.f32 %v125_v21, %v1053_v11  ;;  %v303_v17 = vadd.f32 %v302_v16, %v227_v27 }
  0x36   :  { %v206_v7 = vmul.f32 %v1014_v23, %v1014_v23  ;;  %v278_v51 = vadd.f32 %v277_v28, %v204_v48  ;;  %v230_v27 = vmul.f32 %v1068_v24, %v1068_v24  ;;  %v324_v15 = vadd.f32 %v323_v45, %v1006_v55 }
  0x37   :  { %186 = vadd.xlane.f32.xlu1 %v185_v49  ;;  %v146_v9 = vadd.f32 %v145_v53, %v1016_v50  ;;  %v127_v31 = vadd.f32 %v126_v60, %v1066_v33  ;;  %v1089_v49 = vld [vmem:[#allocation2 + $0x160] sm:$0xff]  ;;  %v304_v21 = vadd.f32 %v303_v17, %v228_v62  ;;  %v231_v16 = vmul.f32 %v1076_v57, %v1076_v57 }
  0x38   :  { %v207_v54 = vmul.f32 %v1030_v12, %v1030_v12  ;;  %v279_v29 = vadd.f32 %v278_v51, %v205_v43  ;;  %v249_v60 = vmul.f32 %v846_v42, %v846_v42  ;;  %v325_v50 = vadd.f32 %v324_v15, %v247_v38  ;;  %v1109_v51 = vld [vmem:[#allocation2 + $0x170] sm:$0xff] }
  0x39   :  { %v147_v28 = vadd.f32 %v146_v9, %v1024_v19  ;;  %v128_v48 = vadd.f32 %v127_v31, %v1081_v25  ;;  %v305_v53 = vadd.f32 %v304_v21, %v229_v3  ;;  %v232_v55 = vmul.f32 %v1089_v49, %v1089_v49 }
  0x3a   :  { %v208_v62 = vmul.f32 %v1043_v20, %v1043_v20  ;;  %v280_v17 = vadd.f32 %v279_v29, %v206_v7  ;;  %v250_v3 = vmul.f32 %v854_v47, %v854_v47  ;;  %v326_v31 = vadd.f32 %v325_v50, %v248_v44 }
  0x3b   :  { %v148_v43 = vadd.f32 %v147_v28, %v1039_v41  ;;  %v131_v45 = vadd.f32 %v130_v52, %v128_v48  ;;  %v306_v9 = vadd.f32 %v305_v53, %v230_v27  ;;  %v209_v38 = vmul.f32 %v1053_v11, %v1053_v11  ;;  %v1120_v27 = vld [vmem:[#allocation2 + $0x178] sm:$0xff]  ;;  %v1127_v53 = vld [vmem:[#allocation2 + $0x180] sm:$0xff] }
  0x3c   :  { %v281_v21 = vadd.f32 %v280_v17, %v207_v54  ;;  %v233_v29 = vmul.f32 %v1102_v36, %v1102_v36  ;;  %v251_v52 = vmul.f32 %v870_v58, %v870_v58  ;;  %v327_v28 = vadd.f32 %v326_v31, %v249_v60  ;;  %v1129_v17 = vld [vmem:[#allocation2 + $0x188] sm:$0xff] }
  0x3d   :  { %v149_v15 = vadd.f32 %v148_v43, %v1055_v61  ;;  %132 = vadd.xlane.f32.xlu0 %v131_v45  ;;  %v307_v7 = vadd.f32 %v306_v9, %v231_v16  ;;  %v234_v50 = vmul.f32 %v1109_v51, %v1109_v51  ;;  %v210_v44 = vmul.f32 %v1066_v33, %v1066_v33 }
  0x3e   :  { %v282_v54 = vadd.f32 %v281_v21, %v208_v62  ;;  %v212_v43 = vmul.f32 %v1062_v37, %v1062_v37  ;;  %v252_v60 = vmul.f32 %v882_v5, %v882_v5  ;;  %v328_v45 = vadd.f32 %v327_v28, %v250_v3 }
  0x3f   :  { %v150_v48 = vadd.f32 %v149_v15, %v1068_v24  ;;  %v308_v16 = vadd.f32 %v307_v7, %v232_v55  ;;  %v211_v9 = vmul.f32 %v1081_v25, %v1081_v25  ;;  %v235_v21 = vmul.f32 %v1120_v27, %v1120_v27 }
  0x40   :  { %v283_v31 = vadd.f32 %v282_v54, %v209_v38  ;;  %v253_v55 = vmul.f32 %v896_v26, %v896_v26  ;;  %v329_v7 = vadd.f32 %v328_v45, %v251_v52  ;;  %v236_v24 = vmul.f32 %v1127_v53, %v1127_v53 }
  0x41   :  { %v151_v62 = vadd.f32 %v150_v48, %v1076_v57  ;;  %v309_v15 = vadd.f32 %v308_v16, %v233_v29  ;;  %v237_v3 = vmul.f32 %v1129_v17, %v1129_v17  ;;  %v286_v54 = vsel %vm129_vm0, %v212_v43, 0.0 }
  0x42   :  { %v284_v28 = vadd.f32 %v283_v31, %v210_v44  ;;  %v254_v48 = vmul.f32 %v915_v46, %v915_v46  ;;  %v330_v29 = vadd.f32 %v329_v7, %v252_v60  ;;  %v255_v45 = vmul.f32 %v931_v63, %v931_v63 }
  0x43   :  { %v152_v61 = vadd.f32 %v151_v62, %v1089_v49  ;;  %v310_v38 = vadd.f32 %v309_v15, %v234_v50  ;;  %v313_v19 = vsel %vm129_vm0, %v237_v3, 0.0  ;;  %v256_v43 = vmul.f32 %v948_v40, %v948_v40 }
  0x44   :  { %v285_v16 = vadd.f32 %v284_v28, %v211_v9  ;;  %v331_v41 = vadd.f32 %v330_v29, %v253_v55 }
  0x45   :  { %v153_v57 = vadd.f32 %v152_v61, %v1102_v36  ;;  %v311_v52 = vadd.f32 %v310_v38, %v235_v21  ;;  %v157_v61 = vsel %vm129_vm0, %v1129_v17, 0.0  ;;  %v257_v21 = vmul.f32 %v963_v32, %v963_v32 }
  0x46   :  { %v287_v44 = vadd.f32 %v286_v54, %v285_v16  ;;  %v332_v62 = vadd.f32 %v331_v41, %v254_v48  ;;  %v259_v41 = vmul.f32 %v995_v59, %v995_v59  ;;  %v262_v38 = vmul.f32 %v957_v56, %v957_v56 }
  0x47   :  { %v154_v31 = vadd.f32 %v153_v57, %v1109_v51  ;;  %v312_v50 = vadd.f32 %v311_v52, %v236_v24  ;;  %v258_v24 = vmul.f32 %v980_v39, %v980_v39  ;;  %v261_v54 = vmul.f32 %v1028_v14, %v1028_v14 }
  0x48   :  { %288 = vadd.xlane.f32.xlu1 %v287_v44  ;;  %v333_v15 = vadd.f32 %v332_v62, %v255_v45  ;;  %v340_v16 = vsel %vm129_vm0, %v262_v38, 0.0 }
  0x49   :  { %v155_v60 = vadd.f32 %v154_v31, %v1120_v27  ;;  %v314_v9 = vadd.f32 %v313_v19, %v312_v50  ;;  %v260_v19 = vmul.f32 %v1012_v30, %v1012_v30 }
  0x4a   :  { %v334_v57 = vadd.f32 %v333_v15, %v256_v43 }
  0x4b   :  { %v156_v55 = vadd.f32 %v155_v60, %v1127_v53  ;;  %315 = vadd.xlane.f32.xlu2 %v314_v9 }
  0x4c   :  { %v335_v3 = vadd.f32 %v334_v57, %v257_v21 }
  0x4d   :  { %v158_v7 = vadd.f32 %v157_v61, %v156_v55 }
  0x4e   :  { %v336_v28 = vadd.f32 %v335_v3, %v258_v24 }
  0x4f   :  { %159 = vadd.xlane.f32.xlu0 %v158_v7  ;;  %v750_v7 = vmov 0  }
  0x50   :  { %v337_v48 = vadd.f32 %v336_v28, %v259_v41  ;;  %686 = vset.pattern.permute.xlu0 %v750_v7  ;;  %688 = vset.pattern.permute.xlu2 %v750_v7 }
  0x51   :  { %687 = vset.pattern.permute.xlu1 %v750_v7 }
  0x52   :  { %v338_v29 = vadd.f32 %v337_v48, %v260_v19 }
  0x54   :  { %v339_v52 = vadd.f32 %v338_v29, %v261_v54 }
  0x56   :  { %v341_v45 = vadd.f32 %v340_v16, %v339_v52 }
  0x58   :  { %342 = vadd.xlane.f32.xlu2 %v341_v45 }
  0xaa   :  { %v187_v44 = vpop.xlane.xlu1 %186 }
  0xab   :  { %v346_v19 = vmul.f32 0.00031887754, %v187_v44  ;;  %v359_v44 = vld [vmem:[%s1444_s1] sm:$0xff] }
  0xad   :  { %v352_v48 = vmul.f32 %v346_v19, %v346_v19 }
  0xb0   :  { %v133_v31 = vpop.xlane.xlu0 %132 }
  0xb1   :  { %v1174_v50 = vmul.f32 0.00031887754, %v133_v31 }
  0xb3   :  { %v350_v62 = vmul.f32 %v1174_v50, %v1174_v50 }
  0xbb   :  { %v289_v43 = vpop.xlane.xlu1 %288 }
  0xbc   :  { %v347_v60 = vmul.f32 0.00031887754, %v289_v43 }
  0xbe   :  { %v353_v9 = vsub.f32 %v347_v60, %v350_v62  ;;  %v316_v61 = vpop.xlane.xlu2 %315 }
  0xbf   :  { %v348_v15 = vmul.f32 0.00031887754, %v316_v61 }
  0xc0   :  { %v356_v21 = vmax.f32 %v353_v9, 0.0 }
  0xc2   :  { %v160_v55 = vpop.xlane.xlu0 %159  ;;  %v362_v24 = vadd.f32 0.001, %v356_v21 }
  0xc3   :  { %v345_v57 = vmul.f32 0.00031887754, %v160_v55 }
  0xc4   :  { %689 = vrsqrt.f32 %v362_v24  ;;  %vm371_vm2 = vweird.f32 %v362_v24 }
  0xc5   :  { %v351_v41 = vmul.f32 %v345_v57, %v345_v57 }
  0xc7   :  { %v354_v3 = vsub.f32 %v348_v15, %v351_v41 }
  0xc9   :  { %v357_v28 = vmax.f32 %v354_v3, 0.0 }
  0xca   :  { %v690_v38 = vpop.eup %689 }
  0xcb   :  { %v363_v54 = vadd.f32 0.001, %v357_v28  ;;  %v366_v29 = vmul.f32 %v690_v38, %v362_v24  ;;  %v343_v16 = vpop.xlane.xlu2 %342  ;;  %vm372_vm1 = vweird.f32 %v690_v38  ;;  %v360_v24 = vld [vmem:[%s1444_s1 + $0x8] sm:$0xff] }
  0xcc   :  { %v349_v45 = vmul.f32 0.00031887754, %v343_v16  ;;  %vm373_vm3 = vmor %vm371_vm2, %vm372_vm1 }
  0xcd   :  { %691 = vrsqrt.f32 %v363_v54  ;;  %v367_v52 = vmul.f32 %v690_v38, %v366_v29  ;;  %vm381_vm5 = vweird.f32 %v363_v54 }
  0xce   :  { %v355_v43 = vsub.f32 %v349_v45, %v352_v48 }
  0xcf   :  { %v368_v31 = vmul.f32 0.5, %v367_v52 }
  0xd0   :  { %v358_v60 = vmax.f32 %v355_v43, 0.0 }
  0xd1   :  { %v369_v62 = vsub.f32 1.5, %v368_v31 }
  0xd2   :  { %v364_v21 = vadd.f32 0.001, %v358_v60  ;;  %v399_v60 = vld [vmem:[%s1445_s2 + $0x8] sm:$0xff] }
  0xd3   :  { %v692_v9 = vpop.eup %691  ;;  %v370_v15 = vmul.f32 %v690_v38, %v369_v62 }
  0xd4   :  { %v376_v61 = vmul.f32 %v692_v9, %v363_v54  ;;  %693 = vrsqrt.f32 %v364_v21  ;;  %vm382_vm4 = vweird.f32 %v692_v9  ;;  %vm391_vm8 = vweird.f32 %v364_v21 }
  0xd5   :  { %v374_v7 = vsel %vm373_vm3, %v690_v38, %v370_v15  ;;  %vm383_vm6 = vmor %vm381_vm5, %vm382_vm4 }
  0xd6   :  { %v377_v55 = vmul.f32 %v692_v9, %v376_v61  ;;  %v395_v41 = vmul.f32 %v374_v7, %v359_v44  ;;  %v361_v61 = vld [vmem:[%s1444_s1 + $0x10] sm:$0xff]  ;;  %s751_s1 = smov [#allocation5]  }
  0xd8   :  { %v378_v3 = vmul.f32 0.5, %v377_v55  ;;  %409 = vperm.xlu0 %686, %v395_v41   ;;  %v398_v55 = vld [vmem:[%s1445_s2] sm:$0xff] }
  0xda   :  { %v379_v28 = vsub.f32 1.5, %v378_v3  ;;  %v694_v48 = vpop.eup %693  ;;  %v400_v3 = vld [vmem:[%s1445_s2 + $0x10] sm:$0xff]  ;;  %s666_s2 = sshll.u32 %s751_s1, 4  ;;  %s667_s2 = int_to_ptr.vmem [resolvable:$true] %s666_s2 }
  0xdb   :  { %v386_v16 = vmul.f32 %v694_v48, %v364_v21  ;;  %vm392_vm7 = vweird.f32 %v694_v48 }
  0xdc   :  { %v380_v29 = vmul.f32 %v692_v9, %v379_v28  ;;  %vm393_vm9 = vmor %vm391_vm8, %vm392_vm7 }
  0xdd   :  { %v387_v31 = vmul.f32 %v694_v48, %v386_v16 }
  0xde   :  { %v384_v52 = vsel %vm383_vm6, %v692_v9, %v380_v29 }
  0xdf   :  { %v396_v45 = vmul.f32 %v384_v52, %v360_v24  ;;  %v388_v43 = vmul.f32 0.5, %v387_v31 }
  0xe1   :  { %414 = vperm.xlu1 %687, %v396_v45   ;;  %v402_v38 = vmul.f32 %v396_v45, %v345_v57  ;;  %v389_v62 = vsub.f32 1.5, %v388_v43  ;;  %v401_v57 = vmul.f32 %v395_v41, %v1174_v50 }
  0xe3   :  { %v390_v54 = vmul.f32 %v694_v48, %v389_v62  ;;  %v405_v9 = vsub.f32 %v399_v60, %v402_v38  ;;  %v404_v7 = vsub.f32 %v398_v55, %v401_v57 }
  0xe5   :  { %v394_v44 = vsel %vm393_vm9, %v694_v48, %v390_v54 }
  0xe6   :  { %v397_v15 = vmul.f32 %v394_v44, %v361_v61 }
  0xe8   :  { %419 = vperm.xlu2 %688, %v397_v15   ;;  %v403_v21 = vmul.f32 %v397_v15, %v346_v19 }
  0xe9   :  { %504 = vperm.xlu1 %687, %v405_v9  }
  0xea   :  { %v406_v28 = vsub.f32 %v400_v3, %v403_v21 }
  0xf0   :  { %499 = vperm.xlu2 %688, %v404_v7  }
  0xf8   :  { %509 = vperm.xlu2 %688, %v406_v28  }
 0x142   :  { %v1197_v48 = vpop.permute.xlu2 %419 }
 0x143   :  { %v472_v50 = vmul.f32 %v1197_v48, %v778_v0  ;;  %v473_v41 = vmul.f32 %v1197_v48, %v780_v1  ;;  %v474_v29 = vmul.f32 %v1197_v48, %v782_v2  ;;  %v475_v19 = vmul.f32 %v1197_v48, %v786_v4 }
 0x144   :  { %v476_v52 = vmul.f32 %v1197_v48, %v789_v6  ;;  %v477_v1 = vmul.f32 %v1197_v48, %v792_v8  ;;  %v478_v2 = vmul.f32 %v1197_v48, %v795_v10  ;;  %v479_v6 = vmul.f32 %v1197_v48, %v810_v18  ;;  %v1519_v8 = vld [vmem:[#allocation13_spill] sm:$0xff] }
 0x145   :  { %v480_v62 = vmul.f32 %v1197_v48, %v816_v22  ;;  %v481_v61 = vmul.f32 %v1197_v48, %v1519_v8  ;;  %v482_v54 = vmul.f32 %v1197_v48, %v834_v34  ;;  %v483_v44 = vmul.f32 %v1197_v48, %v846_v42  ;;  %v1525_v8 = vld [vmem:[#allocation14_spill] sm:$0xff] }
 0x146   :  { %v484_v9 = vmul.f32 %v1197_v48, %v854_v47  ;;  %v485_v57 = vmul.f32 %v1197_v48, %v870_v58  ;;  %v486_v55 = vmul.f32 %v1197_v48, %v882_v5  ;;  %v487_v7 = vmul.f32 %v1197_v48, %v896_v26 }
 0x147   :  { %v488_v21 = vmul.f32 %v1197_v48, %v915_v46  ;;  %v489_v3 = vmul.f32 %v1197_v48, %v931_v63  ;;  %v490_v28 = vmul.f32 %v1197_v48, %v948_v40  ;;  %v493_v40 = vmul.f32 %v1197_v48, %v995_v59 }
 0x148   :  { %v496_v59 = vmul.f32 %v1197_v48, %v957_v56  ;;  %v1524_v56 = vld [vmem:[#allocation12_spill] sm:$0xff] }
 0x14a   :  { %v1199_v24 = vpop.permute.xlu2 %499 }
 0x152   :  { %v1209_v16 = vpop.permute.xlu2 %509 }
 0x153   :  { %v562_v45 = vadd.f32 %v1209_v16, %v472_v50  ;;  %v563_v31 = vadd.f32 %v1209_v16, %v473_v41  ;;  %v564_v0 = vadd.f32 %v1209_v16, %v474_v29  ;;  %v565_v43 = vadd.f32 %v1209_v16, %v475_v19  ;;  %v1264_v29 = vpop.permute.xlu0 %409 }
 0x154   :  { %v566_v4 = vadd.f32 %v1209_v16, %v476_v52  ;;  %v567_v38 = vadd.f32 %v1209_v16, %v477_v1  ;;  %v568_v60 = vadd.f32 %v1209_v16, %v478_v2  ;;  %v569_v10 = vadd.f32 %v1209_v16, %v479_v6 }
 0x155   :  { %637 = vst [vmem:[#allocation5 + $0x190] sm:$0xff] %v562_v45  ;;  %v570_v18 = vadd.f32 %v1209_v16, %v480_v62  ;;  %v571_v22 = vadd.f32 %v1209_v16, %v481_v61  ;;  %v572_v15 = vadd.f32 %v1209_v16, %v482_v54  ;;  %v573_v34 = vadd.f32 %v1209_v16, %v483_v44  ;;  %v1526_v54 = vld [vmem:[#allocation17_spill] sm:$0xff]  ;;  %v1527_v44 = vld [vmem:[#allocation18_spill] sm:$0xff] }
 0x156   :  { %638 = vst [vmem:[#allocation5 + $0x198] sm:$0xff] %v563_v31  ;;  %v574_v42 = vadd.f32 %v1209_v16, %v484_v9  ;;  %v575_v47 = vadd.f32 %v1209_v16, %v485_v57  ;;  %v576_v58 = vadd.f32 %v1209_v16, %v486_v55  ;;  %v577_v5 = vadd.f32 %v1209_v16, %v487_v7  ;;  %v1520_v31 = vld [vmem:[#allocation8_spill] sm:$0xff]  ;;  %v1529_v55 = vld [vmem:[#allocation22_spill] sm:$0xff] }
 0x157   :  { %639 = vst [vmem:[#allocation5 + $0x1a0] sm:$0xff] %v564_v0  ;;  %v578_v26 = vadd.f32 %v1209_v16, %v488_v21  ;;  %v491_v50 = vmul.f32 %v1197_v48, %v963_v32  ;;  %v579_v46 = vadd.f32 %v1209_v16, %v489_v3  ;;  %v492_v41 = vmul.f32 %v1197_v48, %v980_v39  ;;  %v1531_v3 = vld [vmem:[#allocation26_spill] sm:$0xff] }
 0x158   :  { %640 = vst [vmem:[#allocation5 + $0x1a8] sm:$0xff] %v565_v43  ;;  %v580_v63 = vadd.f32 %v1209_v16, %v490_v28  ;;  %v494_v32 = vmul.f32 %v1197_v48, %v1012_v30  ;;  %v495_v39 = vmul.f32 %v1197_v48, %v1028_v14  ;;  %v583_v45 = vadd.f32 %v1209_v16, %v493_v40  ;;  %v1521_v43 = vld [vmem:[#allocation9_spill] sm:$0xff] }
 0x159   :  { %641 = vst [vmem:[#allocation5 + $0x1b0] sm:$0xff] %v566_v4  ;;  %v581_v19 = vadd.f32 %v1209_v16, %v491_v50  ;;  %v582_v52 = vadd.f32 %v1209_v16, %v492_v41  ;;  %v422_v0 = vmul.f32 %v1264_v29, %v1520_v31  ;;  %v423_v30 = vmul.f32 %v1264_v29, %v1521_v43  ;;  %v1522_v4 = vld [vmem:[#allocation10_spill] sm:$0xff] }
 0x15a   :  { %642 = vst [vmem:[#allocation5 + $0x1b8] sm:$0xff] %v567_v38  ;;  %v584_v1 = vadd.f32 %v1209_v16, %v494_v32  ;;  %v585_v2 = vadd.f32 %v1209_v16, %v495_v39  ;;  %v424_v14 = vmul.f32 %v1264_v29, %v1522_v4  ;;  %v586_v6 = vadd.f32 %v1209_v16, %v496_v59  ;;  %v1523_v38 = vld [vmem:[#allocation11_spill] sm:$0xff]  ;;  %v1533_v41 = vld [vmem:[#allocation30_spill] sm:$0xff] }
 0x15b   :  { %643 = vst [vmem:[#allocation5 + $0x1c0] sm:$0xff] %v568_v60  ;;  %v425_v62 = vmul.f32 %v1264_v29, %v1523_v38  ;;  %v426_v48 = vmul.f32 %v1264_v29, %v1524_v56  ;;  %v512_v60 = vadd.f32 %v1199_v24, %v422_v0  ;;  %v427_v61 = vmul.f32 %v1264_v29, %v1525_v8  ;;  %v1535_v39 = vld [vmem:[#allocation34_spill] sm:$0xff] }
 0x15c   :  { %644 = vst [vmem:[#allocation5 + $0x1c8] sm:$0xff] %v569_v10  ;;  %v513_v10 = vadd.f32 %v1199_v24, %v423_v30  ;;  %v428_v16 = vmul.f32 %v1264_v29, %v1526_v54  ;;  %v438_v0 = vmul.f32 %v1264_v29, %v984_v13  ;;  %v439_v43 = vmul.f32 %v1264_v29, %v997_v35 }
 0x15d   :  { %645 = vst [vmem:[#allocation5 + $0x1d0] sm:$0xff] %v570_v18  ;;  %v514_v18 = vadd.f32 %v1199_v24, %v424_v14  ;;  %v515_v9 = vadd.f32 %v1199_v24, %v425_v62  ;;  %v517_v7 = vadd.f32 %v1199_v24, %v427_v61  ;;  %v441_v13 = vmul.f32 %v1264_v29, %v1030_v12 }
 0x15e   :  { %646 = vst [vmem:[#allocation5 + $0x1d8] sm:$0xff] %v571_v22  ;;  %v429_v22 = vmul.f32 %v1264_v29, %v1527_v44  ;;  %v528_v35 = vadd.f32 %v1199_v24, %v438_v0  ;;  %v443_v38 = vmul.f32 %v1264_v29, %v1053_v11  ;;  %v444_v62 = vmul.f32 %v1264_v29, %v1066_v33  ;;  %v1548_v0 = vld [vmem:[#allocation37_spill] sm:$0xff] }
 0x15f   :  { %647 = vst [vmem:[#allocation5 + $0x1e0] sm:$0xff] %v572_v15  ;;  %v1528_v15 = vld [vmem:[#allocation20_spill] sm:$0xff]  ;;  %v445_v56 = vmul.f32 %v1264_v29, %v1081_v25  ;;  %v1536_v25 = vld [vmem:[#allocation15_spill] sm:$0xff] }
 0x160   :  { %648 = vst [vmem:[#allocation5 + $0x1e8] sm:$0xff] %v573_v34  ;;  %v430_v57 = vmul.f32 %v1264_v29, %v1528_v15  ;;  %v516_v34 = vadd.f32 %v1199_v24, %v426_v48  ;;  %v519_v28 = vadd.f32 %v1199_v24, %v429_v22  ;;  %v446_v48 = vmul.f32 %v1264_v29, %v1062_v37  ;;  %v1537_v37 = vld [vmem:[#allocation16_spill] sm:$0xff]  ;;  %v1539_v22 = vld [vmem:[#allocation21_spill] sm:$0xff] }
 0x161   :  { %649 = vst [vmem:[#allocation5 + $0x1f0] sm:$0xff] %v574_v42  ;;  %v431_v42 = vmul.f32 %v1264_v29, %v1529_v55  ;;  %v534_v33 = vadd.f32 %v1199_v24, %v444_v62  ;;  %v535_v61 = vadd.f32 %v1199_v24, %v445_v56  ;;  %v1541_v55 = vld [vmem:[#allocation25_spill] sm:$0xff] }
 0x162   :  { %650 = vst [vmem:[#allocation5 + $0x1f8] sm:$0xff] %v575_v47  ;;  %v1530_v47 = vld [vmem:[#allocation24_spill] sm:$0xff]  ;;  %v536_v54 = vadd.f32 %v1199_v24, %v446_v48  ;;  %v1552_v62 = vld [vmem:[#allocation41_spill] sm:$0xff] }
 0x163   :  { %651 = vst [vmem:[#allocation5 + $0x200] sm:$0xff] %v576_v58  ;;  %v432_v21 = vmul.f32 %v1264_v29, %v1530_v47  ;;  %v518_v58 = vadd.f32 %v1199_v24, %v428_v16  ;;  %v521_v40 = vadd.f32 %v1199_v24, %v431_v42  ;;  %v1538_v16 = vld [vmem:[#allocation19_spill] sm:$0xff] }
 0x164   :  { %652 = vst [vmem:[#allocation5 + $0x208] sm:$0xff] %v577_v5  ;;  %v433_v5 = vmul.f32 %v1264_v29, %v1531_v3  ;;  %v1542_v47 = vld [vmem:[#allocation27_spill] sm:$0xff]  ;;  %v1543_v3 = vld [vmem:[#allocation29_spill] sm:$0xff] }
 0x165   :  { %653 = vst [vmem:[#allocation5 + $0x210] sm:$0xff] %v578_v26  ;;  %v1532_v26 = vld [vmem:[#allocation28_spill] sm:$0xff] }
 0x166   :  { %654 = vst [vmem:[#allocation5 + $0x218] sm:$0xff] %v579_v46  ;;  %v434_v50 = vmul.f32 %v1264_v29, %v1532_v26  ;;  %v520_v46 = vadd.f32 %v1199_v24, %v430_v57  ;;  %v523_v31 = vadd.f32 %v1199_v24, %v433_v5  ;;  %v1540_v57 = vld [vmem:[#allocation23_spill] sm:$0xff] }
 0x167   :  { %655 = vst [vmem:[#allocation5 + $0x220] sm:$0xff] %v580_v63  ;;  %v435_v63 = vmul.f32 %v1264_v29, %v1533_v41  ;;  %v1544_v26 = vld [vmem:[#allocation31_spill] sm:$0xff]  ;;  %v1545_v41 = vld [vmem:[#allocation33_spill] sm:$0xff] }
 0x168   :  { %656 = vst [vmem:[#allocation5 + $0x228] sm:$0xff] %v581_v19  ;;  %v1534_v19 = vld [vmem:[#allocation32_spill] sm:$0xff]  ;;  %v524_v59 = vadd.f32 %v1199_v24, %v434_v50 }
 0x169   :  { %657 = vst [vmem:[#allocation5 + $0x230] sm:$0xff] %v582_v52  ;;  %v436_v32 = vmul.f32 %v1264_v29, %v1534_v19  ;;  %v522_v52 = vadd.f32 %v1199_v24, %v432_v21  ;;  %v525_v30 = vadd.f32 %v1199_v24, %v435_v63  ;;  %v1546_v19 = vld [vmem:[#allocation35_spill] sm:$0xff] }
 0x16a   :  { %658 = vst [vmem:[#allocation5 + $0x238] sm:$0xff] %v583_v45  ;;  %v437_v45 = vmul.f32 %v1264_v29, %v1535_v39  ;;  %v1547_v39 = vld [vmem:[#allocation36_spill] sm:$0xff] }
 0x16b   :  { %659 = vst [vmem:[#allocation5 + $0x240] sm:$0xff] %v584_v1  ;;  %v1328_v1 = vpop.permute.xlu1 %414  ;;  %v526_v4 = vadd.f32 %v1199_v24, %v436_v32 }
 0x16c   :  { %660 = vst [vmem:[#allocation5 + $0x248] sm:$0xff] %v585_v2  ;;  %v440_v2 = vmul.f32 %v1264_v29, %v1014_v23  ;;  %v527_v14 = vadd.f32 %v1199_v24, %v437_v45  ;;  %v529_v23 = vadd.f32 %v1199_v24, %v439_v43  ;;  %v452_v42 = vmul.f32 %v1328_v1, %v1541_v55 }
 0x16d   :  { %661 = vst.msk [vmem:[#allocation5 + $0x250] sm:$0xff] %vm129_vm0, %v586_v6  ;;  %v442_v6 = vmul.f32 %v1264_v29, %v1043_v20  ;;  %v531_v20 = vadd.f32 %v1199_v24, %v441_v13  ;;  %v448_v29 = vmul.f32 %v1328_v1, %v1537_v37  ;;  %v453_v21 = vmul.f32 %v1328_v1, %v1542_v47  ;;  %v1550_v13 = vld [vmem:[#allocation39_spill] sm:$0xff] }
 0x16e   :  { %587 = vst [vmem:[#allocation5] sm:$0xff] %v512_v60  ;;  %v530_v12 = vadd.f32 %v1199_v24, %v440_v2  ;;  %v533_v60 = vadd.f32 %v1199_v24, %v443_v38  ;;  %v454_v5 = vmul.f32 %v1328_v1, %v1543_v3  ;;  %v455_v50 = vmul.f32 %v1328_v1, %v1544_v26 }
 0x16f   :  { %588 = vst [vmem:[#allocation5 + $0x8] sm:$0xff] %v513_v10  ;;  %v532_v11 = vadd.f32 %v1199_v24, %v442_v6  ;;  %v447_v10 = vmul.f32 %v1328_v1, %v1536_v25  ;;  %v451_v24 = vmul.f32 %v1328_v1, %v1540_v57  ;;  %v456_v63 = vmul.f32 %v1328_v1, %v1545_v41 }
 0x170   :  { %589 = vst [vmem:[#allocation5 + $0x10] sm:$0xff] %v514_v18  ;;  %v449_v18 = vmul.f32 %v1328_v1, %v1538_v16  ;;  %v457_v32 = vmul.f32 %v1328_v1, %v1546_v19  ;;  %v458_v45 = vmul.f32 %v1328_v1, %v1547_v39  ;;  %v466_v25 = vmul.f32 %v1328_v1, %v1089_v49 }
 0x171   :  { %590 = vst [vmem:[#allocation5 + $0x18] sm:$0xff] %v515_v9  ;;  %v450_v9 = vmul.f32 %v1328_v1, %v1539_v22  ;;  %v471_v22 = vmul.f32 %v1328_v1, %v1129_v17 }
 0x172   :  { %591 = vst [vmem:[#allocation5 + $0x20] sm:$0xff] %v516_v34 }
 0x173   :  { %592 = vst [vmem:[#allocation5 + $0x28] sm:$0xff] %v517_v7  ;;  %v1356_v8 = vpop.permute.xlu1 %504 }
 0x174   :  { %593 = vst [vmem:[#allocation5 + $0x30] sm:$0xff] %v518_v58  ;;  %v537_v44 = vadd.f32 %v1356_v8, %v447_v10  ;;  %v538_v15 = vadd.f32 %v1356_v8, %v448_v29  ;;  %v539_v34 = vadd.f32 %v1356_v8, %v449_v18  ;;  %v540_v7 = vadd.f32 %v1356_v8, %v450_v9 }
 0x175   :  { %594 = vst [vmem:[#allocation5 + $0x38] sm:$0xff] %v519_v28  ;;  %v541_v58 = vadd.f32 %v1356_v8, %v451_v24  ;;  %v542_v28 = vadd.f32 %v1356_v8, %v452_v42  ;;  %v547_v43 = vadd.f32 %v1356_v8, %v457_v32  ;;  %v468_v29 = vmul.f32 %v1328_v1, %v1109_v51 }
 0x176   :  { %595 = vst [vmem:[#allocation5 + $0x40] sm:$0xff] %v520_v46  ;;  %v543_v46 = vadd.f32 %v1356_v8, %v453_v21  ;;  %v556_v16 = vadd.f32 %v1356_v8, %v466_v25  ;;  %v469_v18 = vmul.f32 %v1328_v1, %v1120_v27  ;;  %v561_v27 = vadd.f32 %v1356_v8, %v471_v22 }
 0x177   :  { %596 = vst [vmem:[#allocation5 + $0x48] sm:$0xff] %v521_v40  ;;  %v544_v40 = vadd.f32 %v1356_v8, %v454_v5 }
 0x178   :  { %597 = vst [vmem:[#allocation5 + $0x50] sm:$0xff] %v522_v52  ;;  %v545_v52 = vadd.f32 %v1356_v8, %v455_v50  ;;  %v559_v51 = vadd.f32 %v1356_v8, %v469_v18 }
 0x179   :  { %598 = vst [vmem:[#allocation5 + $0x58] sm:$0xff] %v523_v31  ;;  %v546_v31 = vadd.f32 %v1356_v8, %v456_v63 }
 0x17a   :  { %599 = vst [vmem:[#allocation5 + $0x60] sm:$0xff] %v524_v59  ;;  %v459_v59 = vmul.f32 %v1328_v1, %v1548_v0 }
 0x17b   :  { %600 = vst [vmem:[#allocation5 + $0x68] sm:$0xff] %v525_v30  ;;  %v1549_v30 = vld [vmem:[#allocation38_spill] sm:$0xff] }
 0x17c   :  { %601 = vst [vmem:[#allocation5 + $0x70] sm:$0xff] %v526_v4  ;;  %v460_v2 = vmul.f32 %v1328_v1, %v1549_v30  ;;  %v548_v4 = vadd.f32 %v1356_v8, %v458_v45  ;;  %v549_v6 = vadd.f32 %v1356_v8, %v459_v59 }
 0x17d   :  { %602 = vst [vmem:[#allocation5 + $0x78] sm:$0xff] %v527_v14  ;;  %v461_v14 = vmul.f32 %v1328_v1, %v1550_v13 }
 0x17e   :  { %603 = vst [vmem:[#allocation5 + $0x80] sm:$0xff] %v528_v35  ;;  %v1551_v35 = vld [vmem:[#allocation40_spill] sm:$0xff] }
 0x17f   :  { %604 = vst [vmem:[#allocation5 + $0x88] sm:$0xff] %v529_v23  ;;  %v462_v38 = vmul.f32 %v1328_v1, %v1551_v35  ;;  %v550_v23 = vadd.f32 %v1356_v8, %v460_v2  ;;  %v551_v56 = vadd.f32 %v1356_v8, %v461_v14 }
 0x180   :  { %605 = vst [vmem:[#allocation5 + $0x90] sm:$0xff] %v530_v12  ;;  %v463_v12 = vmul.f32 %v1328_v1, %v1552_v62 }
 0x181   :  { %606 = vst [vmem:[#allocation5 + $0x98] sm:$0xff] %v531_v20  ;;  %v1553_v20 = vld [vmem:[#allocation42_spill] sm:$0xff] }
 0x182   :  { %607 = vst [vmem:[#allocation5 + $0xa0] sm:$0xff] %v532_v11  ;;  %v464_v48 = vmul.f32 %v1328_v1, %v1553_v20  ;;  %v552_v11 = vadd.f32 %v1356_v8, %v462_v38 }
 0x183   :  { %608 = vst [vmem:[#allocation5 + $0xa8] sm:$0xff] %v533_v60  ;;  %v1554_v60 = vld [vmem:[#allocation43_spill] sm:$0xff] }
 0x184   :  { %609 = vst [vmem:[#allocation5 + $0xb0] sm:$0xff] %v534_v33  ;;  %v465_v33 = vmul.f32 %v1328_v1, %v1554_v60  ;;  %v554_v10 = vadd.f32 %v1356_v8, %v464_v48 }
 0x185   :  { %610 = vst [vmem:[#allocation5 + $0xb8] sm:$0xff] %v535_v61  ;;  %v553_v61 = vadd.f32 %v1356_v8, %v463_v12 }
 0x186   :  { %611 = vst.msk [vmem:[#allocation5 + $0xc0] sm:$0xff] %vm129_vm0, %v536_v54  ;;  %v467_v54 = vmul.f32 %v1328_v1, %v1102_v36  ;;  %v555_v37 = vadd.f32 %v1356_v8, %v465_v33  ;;  %v558_v36 = vadd.f32 %v1356_v8, %v468_v29 }
 0x187   :  { %612 = vst [vmem:[#allocation5 + $0xc8] sm:$0xff] %v537_v44  ;;  %v470_v44 = vmul.f32 %v1328_v1, %v1127_v53 }
 0x188   :  { %613 = vst [vmem:[#allocation5 + $0xd0] sm:$0xff] %v538_v15  ;;  %v557_v49 = vadd.f32 %v1356_v8, %v467_v54 }
 0x189   :  { %614 = vst [vmem:[#allocation5 + $0xd8] sm:$0xff] %v539_v34  ;;  %v560_v9 = vadd.f32 %v1356_v8, %v470_v44 }
 0x18a   :  { %615 = vst [vmem:[#allocation5 + $0xe0] sm:$0xff] %v540_v7 }
 0x18b   :  { %616 = vst [vmem:[#allocation5 + $0xe8] sm:$0xff] %v541_v58 }
 0x18c   :  { %617 = vst [vmem:[#allocation5 + $0xf0] sm:$0xff] %v542_v28 }
 0x18d   :  { %618 = vst [vmem:[#allocation5 + $0xf8] sm:$0xff] %v543_v46 }
 0x18e   :  { %619 = vst [vmem:[#allocation5 + $0x100] sm:$0xff] %v544_v40 }
 0x18f   :  { %620 = vst [vmem:[#allocation5 + $0x108] sm:$0xff] %v545_v52 }
 0x190   :  { %621 = vst [vmem:[#allocation5 + $0x110] sm:$0xff] %v546_v31 }
 0x191   :  { %622 = vst [vmem:[#allocation5 + $0x118] sm:$0xff] %v547_v43 }
 0x192   :  { %623 = vst [vmem:[#allocation5 + $0x120] sm:$0xff] %v548_v4 }
 0x193   :  { %624 = vst [vmem:[#allocation5 + $0x128] sm:$0xff] %v549_v6 }
 0x194   :  { %625 = vst [vmem:[#allocation5 + $0x130] sm:$0xff] %v550_v23 }
 0x195   :  { %626 = vst [vmem:[#allocation5 + $0x138] sm:$0xff] %v551_v56 }
 0x196   :  { %627 = vst [vmem:[#allocation5 + $0x140] sm:$0xff] %v552_v11 }
 0x197   :  { %628 = vst [vmem:[#allocation5 + $0x148] sm:$0xff] %v553_v61 }
 0x198   :  { %629 = vst [vmem:[#allocation5 + $0x150] sm:$0xff] %v554_v10 }
 0x199   :  { %630 = vst [vmem:[#allocation5 + $0x158] sm:$0xff] %v555_v37 }
 0x19a   :  { %631 = vst [vmem:[#allocation5 + $0x160] sm:$0xff] %v556_v16 }
 0x19b   :  { %632 = vst [vmem:[#allocation5 + $0x168] sm:$0xff] %v557_v49 }
 0x19c   :  { %633 = vst [vmem:[#allocation5 + $0x170] sm:$0xff] %v558_v36 }
 0x19d   :  { %634 = vst [vmem:[#allocation5 + $0x178] sm:$0xff] %v559_v51 }
 0x19e   :  { %635 = vst [vmem:[#allocation5 + $0x180] sm:$0xff] %v560_v9 }
 0x19f   :  { %636 = vst.msk [vmem:[#allocation5 + $0x188] sm:$0xff] %vm129_vm0, %v561_v27 }
 0x1a0   :  { %674 = dma.vmem_to_hbm [thread:$0]  %s667_s2, 9600, %s669_s5, [#allocation4], %s748_s17, %s748_s17, %s749_s18  }
 0x1a1   :  { %745 = dma.done.wait [#allocation4], 9600  }
 0x1a2   :  { %746 = vsyncadd [#allocation4], 4294957696 }
 0x1a3   :  { %679 = vsyncpa [#allocation3], 1 }
 0x1a4   :  { %680 = vsyncpa [#allocation4], 1 }

</bundles_post_ra>
